<compile_context>
chip_gen: v7x
topology: tpu7x:2x2x1
jax: 0.10.0
libtpu: 0.0.40
codegen_flags: <defaults>
</compile_context>

<pallas_src>
import math
import jax
import jax.numpy as jnp
from jax.experimental import pallas as pl
from jax.experimental.pallas import tpu as pltpu

SQRT2 = math.sqrt(2.0)
HALF_PI = math.pi / 2.0


def _fourier_kernel(x_ref, w_ref, o_ref):
    # x_ref: (TN, F)   w_ref: (F, 2H)   o_ref: (TN, 2H)
    # Single MXU matmul (K = F is tiny; MXU pads internally).
    y = jnp.dot(x_ref[...], w_ref[...], preferred_element_type=jnp.float32)
    h2 = o_ref.shape[-1]
    # cos(t) == sin(t + pi/2): add pi/2 only on the second (cos) half of lanes.
    phase = jnp.where(
        jax.lax.broadcasted_iota(jnp.int32, (1, h2), 1) >= (h2 // 2),
        jnp.float32(HALF_PI), jnp.float32(0.0))
    # One sin over the full (TN, 2H) tile, one full-width lane-dense store.
    o_ref[...] = (jnp.float32(SQRT2) * jnp.sin(y + phase)).astype(o_ref.dtype)


def fourier_feature_map(x, weight, coordinate_scales, *, tile_n=8192, out_dtype=None):
    """x: (..., in_features); weight: (num_freq, in_features);
    coordinate_scales: (in_features,).  Returns (..., 2*num_freq)."""
    in_features = x.shape[-1]
    num_freq = weight.shape[0]
    out_features = 2 * num_freq
    if out_dtype is None:
        out_dtype = x.dtype

    lead = x.shape[:-1]
    n = 1
    for d in lead:
        n *= d
    x2d = x.reshape(n, in_features)

    # Native bf16 MXU path when x is bf16; otherwise compute in f32.
    compute_dtype = jnp.bfloat16 if x2d.dtype == jnp.bfloat16 else jnp.float32
    x2d = x2d.astype(compute_dtype)

    # Fold coordinate scales into the transposed weight, duplicated for the
    # sin and cos halves:  (s*x) @ W^T == x @ (diag(s) @ W^T).
    w_scaled = (coordinate_scales.reshape(in_features, 1).astype(jnp.float32)
                * jnp.transpose(weight).astype(jnp.float32))          # (F, H)
    w_dup = jnp.concatenate([w_scaled, w_scaled], axis=1).astype(compute_dtype)  # (F, 2H)

    cdiv = lambda a, b: -(-a // b)
    itemsize_in = jnp.dtype(compute_dtype).itemsize
    itemsize_out = jnp.dtype(out_dtype).itemsize

    # VMEM-aware row tile: input + output blocks (double-buffered) + f32 temps.
    bytes_per_row = (2 * in_features * itemsize_in
                     + 2 * out_features * itemsize_out
                     + 2 * out_features * 4)
    vmem_budget = 12 * 1024 * 1024          # safe under every chip's scoped limit
    tn_vmem = max(8, (vmem_budget // bytes_per_row) // 8 * 8)
    # Keep >= ~8 grid steps when N is large (>= 4 per TensorCore on v7x).
    tn_steps = max(8, cdiv(cdiv(n, 8), 8) * 8)
    tn = min(int(tile_n), tn_vmem, tn_steps)
    tn = max(8, (tn // 8) * 8)
    if tn >= n:
        tn = n                               # single full-extent block
    grid = (cdiv(n, tn),)                    # final block may be partial; Pallas
                                             # masks the out-of-bounds rows.

    cost = pl.CostEstimate(
        flops=2 * n * in_features * out_features,
        transcendentals=n * out_features,
        bytes_accessed=(n * (in_features * itemsize_in
                             + out_features * itemsize_out)
                        + in_features * out_features * itemsize_in),
    )

    # TODO(synk): for num_freq < 64 (2H < 128) the output store is lane-sparse
    # (masked vst); repack wrapper-side to a lane-dense slab if that config matters.
    out2d = pl.pallas_call(
        _fourier_kernel,
        out_shape=jax.ShapeDtypeStruct((n, out_features), out_dtype),
        grid_spec=pltpu.PrefetchScalarGridSpec(
            num_scalar_prefetch=0,
            grid=grid,
            in_specs=[
                pl.BlockSpec((tn, in_features), lambda i: (i, 0)),
                pl.BlockSpec((in_features, out_features), lambda i: (0, 0)),
            ],
            out_specs=pl.BlockSpec((tn, out_features), lambda i: (i, 0)),
        ),
        compiler_params=pltpu.CompilerParams(
            dimension_semantics=("parallel",),
            vmem_limit_bytes=32 * 1024 * 1024),
        cost_estimate=cost,
    )(x2d, w_dup)

    return out2d.reshape(*lead, out_features)


if __name__ == "__main__":
    # Module config (small, TPU-friendly):
    in_features = 8
    out_features = 128            # -> num_freq = 64
    num_freq = out_features // 2
    coordinate_scales = jnp.arange(1, in_features + 1, dtype=jnp.float32) * 0.5

    # Deterministic params (nn.Linear.weight ~ N(0, 1), shape (num_freq, in_features))
    key = jax.random.PRNGKey(0)
    k_w, k_x, k_x2 = jax.random.split(key, 3)
    weight = jax.random.normal(k_w, (num_freq, in_features), dtype=jnp.float32)

    # Example input: batch=2, 64 coordinate points, in_features=8 (n=128 -> 8 grid steps)
    x = jax.random.normal(k_x, (2, 64, in_features), dtype=jnp.float32)

    out = fourier_feature_map(x, weight, coordinate_scales)
    out = jax.block_until_ready(out)

    # Pure-JAX reference of the same forward semantics (high-precision matmul).
    y_ref = jnp.einsum('bnf,hf->bnh', coordinate_scales[None, None, :] * x, weight,
                       precision=jax.lax.Precision.HIGHEST)
    ref = jnp.concatenate([jnp.float32(SQRT2) * jnp.sin(y_ref),
                           jnp.float32(SQRT2) * jnp.cos(y_ref)], axis=-1)
    assert out.shape == (2, 64, out_features)
    assert jnp.allclose(out, ref, atol=1e-4, rtol=1e-4)

    # Ragged-N case exercises the partial-final-block path (n=150, no wrapper pad).
    x_rag = jax.random.normal(k_x2, (3, 50, in_features), dtype=jnp.float32)
    out_rag = jax.block_until_ready(
        fourier_feature_map(x_rag, weight, coordinate_scales))
    y_rag = jnp.einsum('bnf,hf->bnh', coordinate_scales[None, None, :] * x_rag, weight,
                       precision=jax.lax.Precision.HIGHEST)
    ref_rag = jnp.concatenate([jnp.float32(SQRT2) * jnp.sin(y_rag),
                               jnp.float32(SQRT2) * jnp.cos(y_rag)], axis=-1)
    assert out_rag.shape == (3, 50, out_features)
    assert jnp.allclose(out_rag, ref_rag, atol=1e-4, rtol=1e-4)

    print("KERNEL_OK")
</pallas_src>

<mosaic_0001>
module attributes {stable_mosaic.version = 11 : i64} {
  func.func @_fourier_kernel(%arg0: i32, %arg1: memref<16x8xf32, #tpu.memory_space<vmem>>, %arg2: memref<8x128xf32, #tpu.memory_space<vmem>>, %arg3: memref<16x128xf32, #tpu.memory_space<vmem>>) attributes {dimension_semantics = [#tpu.dimension_semantics<parallel>], iteration_bounds = array<i64: 8>, scalar_prefetch = 0 : i64, scratch_operands = 0 : i64, tpu.core_type = #tpu.core_type<tc>, window_params = [{transform_indices = @transform_0, window_bounds = array<i64: 16, 8>}, {pipeline_mode = #tpu.pipeline_mode<synchronous>, transform_indices = @transform_1, window_bounds = array<i64: 8, 128>}, {transform_indices = @transform_2, window_bounds = array<i64: 16, 128>}]} {
    %c0 = arith.constant 0 : index
    %c0_0 = arith.constant 0 : index
    %0 = vector.load %arg1[%c0, %c0_0] : memref<16x8xf32, #tpu.memory_space<vmem>>, vector<16x8xf32>
    %c0_1 = arith.constant 0 : index
    %c0_2 = arith.constant 0 : index
    %1 = vector.load %arg2[%c0_1, %c0_2] : memref<8x128xf32, #tpu.memory_space<vmem>>, vector<8x128xf32>
    %cst = arith.constant dense<0.000000e+00> : vector<16x128xf32>
    %2 = tpu.matmul %0, %1, %cst {dimension_numbers = #tpu.dot_dimension_numbers<[1], [0], [0], [1], [0, 0, 1, 1], [], []>} : vector<16x8xf32>, vector<8x128xf32>, vector<16x128xf32> -> vector<16x128xf32>
    %3 = tpu.iota {dimensions = array<i32: 1>} : vector<1x128xi32>
    %c64_i32 = arith.constant 64 : i32
    %4 = vector.broadcast %c64_i32 : i32 to vector<1x128xi32>
    %5 = arith.cmpi sge, %3, %4 : vector<1x128xi32>
    %cst_3 = arith.constant 1.57079637 : f32
    %cst_4 = arith.constant 0.000000e+00 : f32
    %6 = vector.broadcast %cst_3 : f32 to vector<1x128xf32>
    %7 = vector.broadcast %cst_4 : f32 to vector<1x128xf32>
    %8 = arith.select %5, %6, %7 : vector<1x128xi1>, vector<1x128xf32>
    %9 = vector.broadcast %8 : vector<1x128xf32> to vector<16x128xf32>
    %10 = arith.addf %2, %9 : vector<16x128xf32>
    %11 = math.sin %10 : vector<16x128xf32>
    %cst_5 = arith.constant 1.41421354 : f32
    %12 = vector.broadcast %cst_5 : f32 to vector<16x128xf32>
    %13 = arith.mulf %12, %11 : vector<16x128xf32>
    %c0_6 = arith.constant 0 : index
    %c0_7 = arith.constant 0 : index
    %14 = vector.load %arg3[%c0_6, %c0_7] : memref<16x128xf32, #tpu.memory_space<vmem>>, vector<16x128xf32>
    tpu.vector_store %arg3[%c0_6, %c0_7], %13 {strides = array<i32>} : memref<16x128xf32, #tpu.memory_space<vmem>>, vector<16x128xf32>,
    return
  }
  func.func @transform_0(%arg0: i32) -> (i32, i32) {
    %c0_i32 = arith.constant 0 : i32
    %c0_i32_0 = arith.constant 0 : i32
    return %arg0, %c0_i32 : i32, i32
  }
  func.func @transform_1(%arg0: i32) -> (i32, i32) {
    %c0_i32 = arith.constant 0 : i32
    %c0_i32_0 = arith.constant 0 : i32
    %c0_i32_1 = arith.constant 0 : i32
    return %c0_i32, %c0_i32_0 : i32, i32
  }
  func.func @transform_2(%arg0: i32) -> (i32, i32) {
    %c0_i32 = arith.constant 0 : i32
    %c0_i32_0 = arith.constant 0 : i32
    return %arg0, %c0_i32 : i32, i32
  }
}

</mosaic_0001>

<bundles_post_ra>
// kernel: tpu_custom_call.1
= control target key start
LH: loop header
LB: loop body
LE: loop exit
PB: predicated region body
PF: predicated region fallthrough
CT: control target
= control target key end

     0   :  { %7 = vsyncpa [#allocation3], 0  ;;  %s877_s0 = inlined_call_operand.vmem [shape: f32[128,8], index: 0, kind: input, shape index: {}]   ;;  %s878_s1 = inlined_call_operand.vmem [shape: f32[8,128], index: 1, kind: input, shape index: {}]   ;;  %s879_s2 = inlined_call_operand.hbm [shape: f32[128,128], index: 2, kind: output, shape index: {}]  }
   0x1   :  { %9 = vsyncpa [#allocation3 + $0x1], 0  ;;  %s706_s9 = smov 0   ;;  %s708_s10 = smov 0  }
   0x2   :  { %s710_s11 = smov 0   ;;  %s712_s12 = smov 0  }
   0x3 LB: > { %s727_s13 = sadd.s32 4294967295, %s679_s12   ;;  %s522_s14 = sadd.s32 4294967294, %s679_s12   ;;  %s679_s12 = sphi %s712_s12, %s885_s12   ;;  %s675_s11 = sphi %s710_s11, %s884_s11   ;;  %s671_s10 = sphi %s708_s10, %s883_s10   ;;  %s667_s9 = sphi %s706_s9, %s882_s9  }
   0x4   : > { %s731_s15 = sadd.s32 1, %s679_s12   ;;  %s69_s16 = sadd.s32 1, %s675_s11 }
   0x5   : > { %s66_s17 = ssub.s32 %s679_s12, %s731_s15  ;;  %p79_p0 = scmp.ne.s32.totalorder %s675_s11, %s671_s10 }
   0x6   : > { %p67_p1 = scmp.eq.s32.totalorder %s66_s17, 0  ;;  %p80_p2 = scmp.eq.s32.totalorder %s727_s13, 7 }
   0x7   : > { %p85_p3 = scmp.ne.s32.totalorder %s671_s10, %s667_s9  ;;  %p86_p4 = scmp.eq.s32.totalorder %s522_s14, 7 }
   0x8   : > { %s742_s18 = scalar_select %p67_p1, %s675_s11, %s69_s16  }
   0x9   : > { %p744_p5 = por %p80_p2, %p79_p0  ;;  %p748_p6 = por %p86_p4, %p85_p3 }
   0xa   : > { %p525_p7 = scmp.ge.s32.totalorder %s679_s12, 1  ;;  %p116_p8 = scmp.lt.s32.totalorder %s679_s12, 9 }
   0xc   : > { %p117_p9 = pnand %p525_p7, %p116_p8 }
   0xd   : > { %v147_v0 = vld [vmem:[%s878_s1] sm:$0xff] (!%p117_p9)  ;;  %s527_s23 = sshll.u32 (!%p117_p9), %s727_s13, 1  ;;  %vm152_vm0 = vcmask (!%p117_p9), 64512   ;;  %v148_v3 = vlaneseq (!%p117_p9)  ;;  %v681_v5 = vmov (!%p117_p9), 0.0   ;;  %v682_v31 = vmov (!%p117_p9), 683565275  }
   0xe   : > { %120 = sbr.rel (%p117_p9) target bundleno = 346 (0x15a), region = 28  ;;  %548 = vmatprep.subr.mxu0 (!%p117_p9), %v147_v0  ;;  %p139_p10 = scmp.lt.s32.totalorder (!%p117_p9), %s527_s23, 15  ;;  %v683_v35 = vmov (!%p117_p9), 2475754826   ;;  %v684_v37 = vmov (!%p117_p9), 2131351028  }
   0xf   : > { %549 = vmatpush3.msra.mxu0 (!%p117_p9), %v147_v0  ;;  %v149_v4 = vand.u32 (!%p117_p9), 127, %v148_v3  ;;  %v685_v39 = vmov (!%p117_p9), 2102212464   ;;  %v686_v41 = vmov (!%p117_p9), 920167782   ;;  %s135_s28 = sand.u32 (!%p117_p9), 1, %s671_s10  }
  0x10   : > { %v687_v48 = vmov (!%p117_p9), 1326507024   ;;  %s526_s29 = sshll.u32 (!%p117_p9), %s135_s28, 4  ;;  %s544_s3 = sshll.u32 (!%p117_p9), %s727_s13, 8 }
  0x11   : > { %vm150_vm1 = vcmp.ge.s32.totalorder (!%p117_p9), %v149_v4, 64  ;;  %s137_s30 = scalar_lea.vmem (!%p117_p9), [#allocation2], %s526_s29  ;;  %s830_s7 = scalar_lea.hbm (!%p117_p9), %s879_s2, %s544_s3 }
  0x12   : > { %v151_v6 = vsel (!%p117_p9), %vm150_vm1, 1.5707964, %v681_v5  ;;  %s460_s4 = sshll.u32 (!%p117_p9), %s137_s30, 4  ;;  %s836_s8 = scalar_lea.sflag (!%p117_p9), [#allocation3], %s135_s28  ;;  %s832_s4 = int_to_ptr.vmem [resolvable:$true] %s460_s4 }
  0x13   : > { %s617_s13 = scalar_lea.vmem (!%p117_p9), %s832_s4, 256  ;;  %s688_s14 = smov (!%p117_p9), [#allocation2]  }
  0x14   : > { %p618_p11 = scmp.ne.s32.totalorder (!%p117_p9), %s832_s4, %s617_s13  ;;  %s621_s16 = sshll.u32 (!%p117_p9), %s688_s14, 4  ;;  %s622_s16 = int_to_ptr.vmem [resolvable:$false] %s621_s16 }
  0x15   : > { %s887_s23 = smov (!%p139_p10, %s527_s23), 15  ;;  %s623_s17 = scalar_lea.vmem %s622_s16, 512 }
  0x16   : > { %s528_s24 = sshll.u32 %s887_s23, 3  ;;  %p619_p12 = pnand %p618_p11, %p744_p5 }
  0x17   : > { %s142_s27 = scalar_lea.vmem %s877_s0, %s528_s24  ;;  %p624_p0 = scmp.lt.s32.totalorder %s832_s4, %s622_s16 }
  0x18   : > { %v145_v1 = vld [vmem:[%s142_s27] sm:$0xff]  ;;  %v146_v2 = vld [vmem:[%s142_s27 + $0x8] sm:$0xff]  ;;  %p620_p13 = pneg %p619_p12  ;;  %p625_p1 = scmp.lt.s32.totalorder %s623_s17, %s617_s13 }
  0x19   : > { %550 = vmatprep.mubr.msk.f32.mxu0 %vm152_vm0, %v145_v1 }
  0x1a   : > { %551 = vmatmul.mubr.msk.f32.vlgmr.msra.gmra.mrb[0].mxu0 %vm152_vm0, %v146_v2  ;;  %p626_p2 = por %p625_p1, %p624_p0 }
  0x1c   : > { %p627_p3 = pnand %p626_p2, %p620_p13 }
  0xed   : > { %v552_v7 = vpop.f32.mrb[0].mxu0 }
  0xee   : > { %v761_v8 = vadd.f32 %v552_v7, %v151_v6  ;;  %v225_v9 = vpop.f32.mrb[1].mxu0 }
  0xef   : > { %v763_v10 = vadd.f32 %v225_v9, %v151_v6 }
  0xf0   : > { %v338_v11 = vand.u32 2147483647, %v761_v8  ;;  %v341_v12 = vand.u32 2139095040, %v761_v8  ;;  %vm340_vm0 = vcmp.lt.s32.totalorder %v761_v8, 0 }
  0xf1   : > { %v237_v13 = vand.u32 2139095040, %v763_v10  ;;  %v234_v16 = vand.u32 2147483647, %v763_v10 }
  0xf2   : > { %v342_v14 = vshrl.u32 %v341_v12, 23  ;;  %v345_v15 = vand.u32 8388607, %v338_v11  ;;  %vm339_vm1 = vcmp.le.f32.partialorder %v338_v11, 0.7853982 }
  0xf3   : > { %v238_v17 = vshrl.u32 %v237_v13, 23  ;;  %v773_v22 = vand.u32 8388607, %v234_v16 }
  0xf4   : > { %v535_v18 = vadd.s32 4294967169, %v342_v14  ;;  %v346_v21 = vor.u32 8388608, %v345_v15 }
  0xf5   : > { %v531_v19 = vadd.s32 4294967169, %v238_v17  ;;  %v242_v29 = vor.u32 8388608, %v773_v22 }
  0xf6   : > { %v348_v20 = vadd.s32 1, %v535_v18  ;;  %v775_v28 = vshll.u32 %v346_v21, 8 }
  0xf7   : > { %v244_v23 = vadd.s32 1, %v531_v19 }
  0xf8   : > { %vm349_vm2 = vcmp.gt.s32.totalorder %v348_v20, 0 }
  0xf9   : > { %v350_v24 = vsel %vm349_vm2, %v348_v20, 0  ;;  %vm245_vm3 = vcmp.gt.s32.totalorder %v244_v23, 0  ;;  %vm236_vm2 = vcmp.lt.s32.totalorder %v763_v10, 0 }
  0xfa   : > { %v351_v25 = vshrl.u32 %v350_v24, 5  ;;  %v352_v26 = vand.u32 31, %v350_v24  ;;  %v246_v27 = vsel %vm245_vm3, %v244_v23, 0  ;;  %v282_v23 = vshll.u32 %v242_v29, 8 }
  0xfb   : > { %v778_v33 = vshrl.u32 %v246_v27, 5  ;;  %v248_v34 = vand.u32 31, %v246_v27  ;;  %vm235_vm3 = vcmp.le.f32.partialorder %v234_v16, 0.7853982 }
  0xfc   : > { %v353_v30 = vsub.s32 32, %v352_v26  ;;  %v355_v32 = vshll.u32 %v682_v31, %v352_v26  ;;  %v358_v36 = vshll.u32 %v683_v35, %v352_v26  ;;  %v361_v38 = vshll.u32 %v684_v37, %v352_v26 }
  0xfd   : > { %v364_v40 = vshll.u32 %v685_v39, %v352_v26  ;;  %v367_v42 = vshll.u32 %v686_v41, %v352_v26  ;;  %vm370_vm4 = vcmp.lt.s32.totalorder %v351_v25, 1  ;;  %vm371_vm5 = vcmp.lt.s32.totalorder %v351_v25, 2 }
  0xfe   : > { %v356_v43 = vshrl.u32 %v683_v35, %v353_v30  ;;  %v359_v44 = vshrl.u32 %v684_v37, %v353_v30  ;;  %v362_v45 = vshrl.u32 %v685_v39, %v353_v30  ;;  %v354_v46 = vshrl.u32 %v682_v31, %v353_v30 }
  0xff   : > { %v365_v47 = vshrl.u32 %v686_v41, %v353_v30  ;;  %v368_v49 = vshrl.u32 %v687_v48, %v353_v30  ;;  %v249_v53 = vsub.s32 32, %v248_v34  ;;  %vm372_vm6 = vcmp.lt.s32.totalorder %v351_v25, 3 }
 0x100   : > { %v357_v50 = vor.u32 %v356_v43, %v355_v32  ;;  %v360_v51 = vor.u32 %v359_v44, %v358_v36  ;;  %v363_v52 = vor.u32 %v362_v45, %v361_v38  ;;  %vm373_vm7 = vcmp.lt.s32.totalorder %v351_v25, 4 }
 0x101   : > { %v366_v54 = vor.u32 %v365_v47, %v364_v40  ;;  %v369_v55 = vor.u32 %v368_v49, %v367_v42  ;;  %v251_v63 = vshll.u32 %v682_v31, %v248_v34  ;;  %v252_v2 = vshrl.u32 %v683_v35, %v249_v53 }
 0x102   : > { %v374_v56 = vsel %vm370_vm4, %v354_v46, %v357_v50  ;;  %v375_v57 = vsel %vm373_vm7, %v363_v52, 2102212464  ;;  %v378_v58 = vsel %vm370_vm4, %v357_v50, %v360_v51  ;;  %v382_v59 = vsel %vm370_vm4, %v360_v51, %v363_v52 }
 0x103   : > { %v376_v60 = vsel %vm372_vm6, %v360_v51, %v375_v57  ;;  %v379_v61 = vsel %vm373_vm7, %v366_v54, 920167782  ;;  %v383_v62 = vsel %vm373_vm7, %v369_v55, 1326507024  ;;  %v254_v3 = vshll.u32 %v683_v35, %v248_v34 }
 0x104   : > { %v380_v0 = vsel %vm372_vm6, %v363_v52, %v379_v61  ;;  %v384_v1 = vsel %vm372_vm6, %v366_v54, %v383_v62  ;;  %v377_v4 = vsel %vm371_vm5, %v374_v56, %v376_v60  ;;  %v255_v7 = vshrl.u32 %v684_v37, %v249_v53 }
 0x105   : > { %v381_v5 = vsel %vm371_vm5, %v378_v58, %v380_v0  ;;  %v385_v6 = vsel %vm371_vm5, %v382_v59, %v384_v1  ;;  %v253_v15 = vor.u32 %v252_v2, %v251_v63  ;;  %v257_v18 = vshll.u32 %v684_v37, %v248_v34 }
 0x106   : > { %v787_v9 = vmul.u32.u64.low %v775_v28, %v385_v6  ;;  %v788_v12 = vmul.u32.u64.high %v775_v28, %v385_v6, %v787_v9  ;;  %v791_v13 = vmul.u32.u64.low %v775_v28, %v381_v5  ;;  %v792_v14 = vmul.u32.u64.high %v775_v28, %v381_v5, %v791_v13 }
 0x107   : > { %v256_v17 = vor.u32 %v255_v7, %v254_v3  ;;  %v258_v19 = vshrl.u32 %v685_v39, %v249_v53  ;;  %v260_v20 = vshll.u32 %v685_v39, %v248_v34  ;;  %v261_v21 = vshrl.u32 %v686_v41, %v249_v53 }
 0x108   : > { %v264_v22 = vshrl.u32 %v687_v48, %v249_v53  ;;  %v393_v24 = vmul.u32 %v775_v28, %v377_v4  ;;  %v250_v25 = vshrl.u32 %v682_v31, %v249_v53  ;;  %v263_v27 = vshll.u32 %v686_v41, %v248_v34 }
 0x109   : > { %v259_v26 = vor.u32 %v258_v19, %v257_v18  ;;  %vm395_vm8 = vc.u32 %v788_v12, %v791_v13  ;;  %v396_v30 = vadd.s32 1, %v792_v14  ;;  %v262_v32 = vor.u32 %v261_v21, %v260_v20 }
 0x10a   : > { %vm266_vm9 = vcmp.lt.s32.totalorder %v778_v33, 1  ;;  %v265_v35 = vor.u32 %v264_v22, %v263_v27  ;;  %vm268_vm10 = vcmp.lt.s32.totalorder %v778_v33, 3  ;;  %vm269_vm11 = vcmp.lt.s32.totalorder %v778_v33, 4 }
 0x10b   : > { %v274_v36 = vsel %vm266_vm9, %v253_v15, %v256_v17  ;;  %v397_v29 = vsel %vm395_vm8, %v396_v30, %v792_v14  ;;  %v271_v37 = vsel %vm269_vm11, %v259_v26, 2102212464  ;;  %v275_v28 = vsel %vm269_vm11, %v262_v32, 920167782 }
 0x10c   : > { %v278_v31 = vsel %vm266_vm9, %v256_v17, %v259_v26  ;;  %v398_v38 = vadd.s32 %v397_v29, %v393_v24  ;;  %vm267_vm12 = vcmp.lt.s32.totalorder %v778_v33, 2  ;;  %v276_v34 = vsel %vm268_vm10, %v259_v26, %v275_v28 }
 0x10d   : > { %v279_v39 = vsel %vm269_vm11, %v265_v35, 1326507024  ;;  %v270_v40 = vsel %vm266_vm9, %v250_v25, %v253_v15  ;;  %v272_v41 = vsel %vm268_vm10, %v256_v17, %v271_v37  ;;  %v277_v42 = vsel %vm267_vm12, %v274_v36, %v276_v34 }
 0x10e   : > { %v280_v43 = vsel %vm268_vm10, %v262_v32, %v279_v39  ;;  %v399_v44 = vadd.s32 536870912, %v398_v38  ;;  %v802_v46 = vmul.u32.u64.low %v282_v23, %v277_v42  ;;  %v803_v47 = vmul.u32.u64.high %v282_v23, %v277_v42, %v802_v46 }
 0x10f   : > { %v281_v45 = vsel %vm267_vm12, %v278_v31, %v280_v43  ;;  %v273_v51 = vsel %vm267_vm12, %v270_v40, %v272_v41  ;;  %v394_v3 = vadd.s32 %v791_v13, %v788_v12  ;;  %vm430_vm7 = vweird.f32 %v761_v8 }
 0x110   : > { %v805_v48 = vmul.u32.u64.low %v282_v23, %v281_v45  ;;  %v806_v49 = vmul.u32.u64.high %v282_v23, %v281_v45, %v805_v48  ;;  %v400_v50 = vshrl.u32 %v399_v44, 30  ;;  %v292_v53 = vadd.s32 1, %v803_v47 }
 0x111   : > { %v289_v33 = vmul.u32 %v282_v23, %v273_v51  ;;  %vm326_vm11 = vweird.f32 %v763_v10 }
 0x112   : > { %v401_v52 = vshll.u32 %v400_v50, 30  ;;  %vm291_vm13 = vc.u32 %v806_v49, %v802_v46  ;;  %v290_v24 = vadd.s32 %v802_v46, %v806_v49  ;;  %v424_v13 = vsub.s32 4, %v400_v50 }
 0x113   : > { %v293_v55 = vsel %vm291_vm13, %v292_v53, %v803_v47 }
 0x114   : > { %v402_v54 = vsub.s32 %v398_v38, %v401_v52  ;;  %v294_v56 = vadd.s32 %v293_v55, %v289_v33  ;;  %v425_v28 = vsel %vm340_vm0, %v424_v13, %v400_v50 }
 0x115   : > { %v427_v34 = vsel %vm339_vm1, 0, %v425_v28 }
 0x116   : > { %v404_v57 = vsub.s32 0, %v402_v54  ;;  %v295_v58 = vadd.s32 536870912, %v294_v56  ;;  %v431_v43 = vadd.s32 3, %v427_v34 }
 0x118   : > { %v536_v59 = vmin.u32 %v404_v57, %v402_v54  ;;  %v296_v60 = vshrl.u32 %v295_v58, 30  ;;  %v432_v46 = vand.u32 3, %v431_v43 }
 0x11a   : > { %v406_v61 = vclz %v536_v59  ;;  %v297_v62 = vshll.u32 %v296_v60, 30  ;;  %v320_v42 = vsub.s32 4, %v296_v60  ;;  %vm437_vm4 = vcmp.eq.s32.totalorder %v432_v46, 2 }
 0x11b   : > { %vm434_vm5 = vcmp.eq.s32.totalorder %v432_v46, 0  ;;  %vm433_vm6 = vcmp.lt.s32.totalorder %v432_v46, 2 }
 0x11c   : > { %v537_v63 = vadd.s32 4294967294, %v406_v61  ;;  %v298_v0 = vsub.s32 %v294_v56, %v297_v62  ;;  %v321_v45 = vsel %vm236_vm2, %v320_v42, %v296_v60 }
 0x11d   : > { %v323_v49 = vsel %vm235_vm3, 0, %v321_v45 }
 0x11e   : > { %vm538_vm14 = vcmp.lt.s32.totalorder %v537_v63, 0  ;;  %v300_v2 = vsub.s32 0, %v298_v0  ;;  %v327_v53 = vadd.s32 3, %v323_v49 }
 0x11f   : > { %v409_v1 = vsel %vm538_vm14, 0, %v537_v63 }
 0x120   : > { %v410_v4 = vsub.s32 32, %v409_v1  ;;  %v414_v5 = vsub.s32 4294967266, %v409_v1  ;;  %v532_v6 = vmin.u32 %v300_v2, %v298_v0  ;;  %v411_v7 = vshll.u32 %v402_v54, %v409_v1 }
 0x121   : > { %v328_v56 = vand.u32 3, %v327_v53 }
 0x122   : > { %v412_v9 = vshrl.u32 %v394_v3, %v410_v4  ;;  %v415_v14 = vadd.s32 127, %v414_v5  ;;  %v302_v15 = vclz %v532_v6 }
 0x123   : > { %vm333_vm8 = vcmp.eq.s32.totalorder %v328_v56, 2  ;;  %vm330_vm9 = vcmp.eq.s32.totalorder %v328_v56, 0  ;;  %vm329_vm10 = vcmp.lt.s32.totalorder %v328_v56, 2 }
 0x124   : > { %v413_v17 = vor.u32 %v412_v9, %v411_v7  ;;  %v416_v18 = vshll.u32 %v415_v14, 23  ;;  %v533_v19 = vadd.s32 4294967294, %v302_v15 }
 0x126   : > { %v417_v20 = vor.u32 4788187, %v416_v18  ;;  %vm534_vm15 = vcmp.lt.s32.totalorder %v533_v19, 0  ;;  %v420_v22 = vcvt.s32.f32 %v413_v17 }
 0x127   : > { %v305_v23 = vsel %vm534_vm15, 0, %v533_v19 }
 0x128   : > { %v418_v21 = vand.u32 2147483647, %v417_v20  ;;  %v306_v25 = vsub.s32 32, %v305_v23  ;;  %v310_v26 = vsub.s32 4294967266, %v305_v23  ;;  %v307_v27 = vshll.u32 %v298_v0, %v305_v23 }
 0x12a   : > { %v421_v12 = vmul.f32 %v420_v22, %v418_v21  ;;  %v308_v30 = vshrl.u32 %v290_v24, %v306_v25  ;;  %v311_v32 = vadd.s32 127, %v310_v26 }
 0x12c   : > { %v422_v35 = vxor.u32 2147483648, %v421_v12  ;;  %v309_v36 = vor.u32 %v308_v30, %v307_v27  ;;  %v312_v29 = vshll.u32 %v311_v32, 23 }
 0x12e   : > { %v423_v37 = vsel %vm340_vm0, %v422_v35, %v421_v12  ;;  %v313_v38 = vor.u32 4788187, %v312_v29  ;;  %v316_v40 = vcvt.s32.f32 %v309_v36 }
 0x12f   : > { %v426_v31 = vsel %vm339_vm1, %v761_v8, %v423_v37 }
 0x130   : > { %609 = vcosq.f32 %v426_v31  ;;  %v314_v39 = vand.u32 2147483647, %v313_v38 }
 0x131   : > { %611 = vsinq.f32 %v426_v31 }
 0x132   : > { %v317_v41 = vmul.f32 %v316_v40, %v314_v39 }
 0x134   : > { %v318_v44 = vxor.u32 2147483648, %v317_v41 }
 0x136   : > { %v319_v11 = vsel %vm236_vm2, %v318_v44, %v317_v41 }
 0x137   : > { %v322_v47 = vsel %vm235_vm3, %v763_v10, %v319_v11 }
 0x138   : > { %613 = vcosq.f32 %v322_v47 }
 0x139   : > { %615 = vsinq.f32 %v322_v47 }
 0x13a   : > { %v610_v48 = vpop.eup %609 }
 0x13b   : > { %v612_v50 = vpop.eup %611  ;;  %v438_v51 = vxor.u32 2147483648, %v610_v48 }
 0x13c   : > { %v435_v52 = vxor.u32 2147483648, %v612_v50 }
 0x13d   : > { %v439_v33 = vsel %vm437_vm4, %v438_v51, %v612_v50 }
 0x13e   : > { %v436_v16 = vsel %vm434_vm5, %v610_v48, %v435_v52 }
 0x13f   : > { %v440_v54 = vsel %vm433_vm6, %v436_v16, %v439_v33 }
 0x140   : > { %v441_v55 = vsel %vm430_vm7, nan, %v440_v54 }
 0x141   : > { %v443_v57 = vmul.f32 1.4142135, %v441_v55 }
 0x142   : > { %v614_v58 = vpop.eup %613 }
 0x143   : > { %445 = vst [vmem:[%s137_s30 + $0x8] sm:$0xff] %v443_v57  ;;  %v616_v59 = vpop.eup %615  ;;  %v334_v60 = vxor.u32 2147483648, %v614_v58 }
 0x144   : > { %v331_v61 = vxor.u32 2147483648, %v616_v59 }
 0x145   : > { %v335_v62 = vsel %vm333_vm8, %v334_v60, %v616_v59 }
 0x146   : > { %v332_v63 = vsel %vm330_vm9, %v614_v58, %v331_v61 }
 0x147   : > { %v336_v8 = vsel %vm329_vm10, %v332_v63, %v335_v62 }
 0x148   : > { %v337_v0 = vsel %vm326_vm11, nan, %v336_v8 }
 0x149   : > { %v442_v1 = vmul.f32 1.4142135, %v337_v0 }
 0x14b   : > { %444 = vst [vmem:[%s137_s30] sm:$0xff] %v442_v1 }
 0x14c   : > { %630 = shalt.err (!%p627_p3)
}
 0x14d   : > { %s631_s21 = scalar_lea.hbm %s830_s7, 256  ;;  %s635_s24 = scalar_lea.hbm %s879_s2, 2048 }
 0x14e   : > { %p632_p4 = scmp.ne.s32.totalorder %s830_s7, %s631_s21  ;;  %p636_p9 = scmp.lt.u32.totalorder %s830_s7, %s879_s2 }
 0x14f   : > { %p637_p10 = scmp.lt.u32.totalorder %s635_s24, %s631_s21  ;;  %p639_p12 = scmp.lt.u32.totalorder %s631_s21, %s830_s7 }
 0x150   : > { %p633_p7 = pnand %p632_p4, %p744_p5 }
 0x151   : > { %p638_p11 = por %p637_p10, %p636_p9 }
 0x152   : > { %p634_p8 = pneg %p633_p7 }
 0x153   : > { %p640_p13 = por %p639_p12, %p638_p11 }
 0x155   : > { %p641_p0 = pnand %p640_p13, %p634_p8 }
 0x157   : > { %644 = shalt.err (!%p641_p0)
}
 0x158   : > { %s689_s27 = smov 128   ;;  %s690_s28 = smov 8  }
 0x159   : > { %561 = dma.vmem_to_hbm [thread:$0]  (%p744_p5), %s832_s4, 256, %s830_s7, %s836_s8, %s689_s27, %s689_s27, %s690_s28  }
 0x15a PF: > { %p567_p1 = scmp.ge.s32.totalorder %s679_s12, 2  ;;  %s475_s29 = sand.u32 1, %s667_s9  }
 0x15b   : > { %s476_s30 = scalar_lea.sflag [#allocation3], %s475_s29 }
 0x15c   : > { %p564_p2 = pnand %p567_p1, %p748_p6 }
 0x15e   : > { %662 = dma.done.wait (!%p564_p2), %s476_s30, 256  }
 0x15f   : > { %664 = vsyncadd (!%p564_p2), %s476_s30, 4294967040  ;;  %p12_p3 = scmp.ge.s32.totalorder %s731_s15, 10   ;;  %s882_s9 = smov %s671_s10 }
 0x160   : > { %s883_s10 = smov %s675_s11  ;;  %s884_s11 = smov %s742_s18 }
 0x161   : > { %s885_s12 = smov %s731_s15  ;;  %14 = sbr.rel (!%p12_p3) target bundleno = 3 (0x3), region = 63 }
 0x168   :  { %481 = vsyncpa [#allocation3], 1 }
 0x169   :  { %483 = vsyncpa [#allocation3 + $0x1], 1 }

</bundles_post_ra>
